<compile_context>
chip_gen: v6e
topology: v6e:2x2x1
jax: 0.10.0
libtpu: 0.0.40
codegen_flags: <defaults>
</compile_context>

<pallas_src>
import jax
import jax.numpy as jnp
from jax.experimental import pallas as pl
from jax.experimental.pallas import tpu as pltpu


def _round_up(x, m):
    return (x + m - 1) // m * m


# ---------------------------------------------------------------------------
# complex64 <-> interleaved-f32 reinterpretation (zero-cost when supported).
# ---------------------------------------------------------------------------
def _to_interleaved_f32(z):
    """complex64 (..., N) -> f32 (..., 2N) with columns [Re, Im] interleaved."""
    z = z.astype(jnp.complex64)
    out_shape = (*z.shape[:-1], 2 * z.shape[-1])
    try:
        # Zero-cost bit reinterpretation (complex64 is stored as [re, im] pairs).
        return jax.lax.bitcast_convert_type(z, jnp.float32).reshape(out_shape)
    except Exception:
        # Fallback for JAX versions without complex bitcast: one fused pass.
        return z.view(jnp.float32)


def _from_interleaved_f32(f):
    """f32 (..., 2N) interleaved [Re, Im] -> complex64 (..., N)."""
    pair_shape = (*f.shape[:-1], f.shape[-1] // 2, 2)
    try:
        return jax.lax.bitcast_convert_type(f.reshape(pair_shape), jnp.complex64)
    except Exception:
        return f.view(jnp.complex64)


# ---------------------------------------------------------------------------
# Kernel
# ---------------------------------------------------------------------------
def _complex_linear_kernel(x_ref, w_ref, b_ref, o_ref):
    k = pl.program_id(2)

    @pl.when(k == 0)
    def _():
        # Output tile is the accumulator (resident across the k axis) -> must
        # be zero-initialized on the first reduction step.
        o_ref[...] = jnp.zeros_like(o_ref)

    # Single real MXU matmul on the interleaved planes, f32 accumulation
    # directly into the resident output tile (no separate scratch).
    o_ref[...] += jnp.dot(
        x_ref[...], w_ref[...],
        preferred_element_type=jnp.float32,
        precision=jax.lax.Precision.HIGHEST,  # guarantee 1e-5 vs complex64 ref
    )

    @pl.when(k == pl.num_programs(2) - 1)
    def _():
        # Bias + CReLU fused into the finalize step only (VALU work under MXU).
        o_ref[...] = jnp.maximum(o_ref[...] + b_ref[...], 0.0)


# ---------------------------------------------------------------------------
# Parameter prep (hoist / cache across forward calls — depends on A, b only).
# ---------------------------------------------------------------------------
def prepare_params(A, b):
    """Returns (W, b2): interleaved real views of the complex parameters.

    W : (2L, 2M) f32 — per-(l, m) 2x2 block [[ar, ai], [-ai, ar]]
    b2: (1, 2M)  f32 — [Re(b_m), Im(b_m)] interleaved
    """
    L, M = A.shape
    ar = jnp.real(A).astype(jnp.float32)
    ai = jnp.imag(A).astype(jnp.float32)
    w_even = jnp.stack([ar, ai], axis=-1)    # rows 2l   (hit by Re(x))
    w_odd = jnp.stack([-ai, ar], axis=-1)    # rows 2l+1 (hit by Im(x))
    W = jnp.stack([w_even, w_odd], axis=1).reshape(2 * L, 2 * M)
    b2 = _to_interleaved_f32(b)              # (1, 2M)
    return W, b2


# ---------------------------------------------------------------------------
# Forward
# ---------------------------------------------------------------------------
def complex_simple_layer(x, A, b, *, tm=512, tn=1024, tk=512):
    """x: (B, K, L) complex64, A: (L, M) complex64, b: (1, M) complex64.
    Returns (B, K, M) complex64 = CReLU(x @ A + b)."""
    B, K, L = x.shape
    M = A.shape[1]
    BK = B * K
    L2, M2 = 2 * L, 2 * M

    # Interleaved real views (zero-cost bitcast where supported).
    x2 = _to_interleaved_f32(x).reshape(BK, L2)
    W, b2 = prepare_params(A, b)

    # --- tile selection: honor (8, 128), clip to padded dims ------------------
    BK8 = _round_up(BK, 8)
    M2a = _round_up(M2, 128)
    L2a = _round_up(L2, 128)
    tm = min(tm, BK8)
    tn = min(tn, M2a)
    tk = min(tk, L2a)

    # v7x megacore: ensure at least one 'parallel' grid axis has >= 2 programs
    # whenever the problem is large enough to split.
    if BK8 // tm <= 1 and M2a // tn <= 1:
        if BK8 >= 16:
            tm = _round_up(pl.cdiv(BK8, 2), 8)
        elif M2a >= 256:
            tn = _round_up(pl.cdiv(M2a, 2), 128)

    BKp = _round_up(BK, tm)
    L2p = _round_up(L2, tk)
    M2p = _round_up(M2, tn)

    # Zero-padding of x rows / W rows keeps padded K-chunks contributing 0.
    x2 = jnp.pad(x2, ((0, BKp - BK), (0, L2p - L2)))
    W = jnp.pad(W, ((0, L2p - L2), (0, M2p - M2)))
    b2 = jnp.pad(b2, ((0, 0), (0, M2p - M2)))

    grid = (BKp // tm, M2p // tn, L2p // tk)

    # VMEM budget: actual double-buffered tile footprint + headroom, capped.
    def _tile_bytes(r, c):
        return _round_up(r, 8) * _round_up(c, 128) * 4

    vmem_needed = 2 * (_tile_bytes(tm, tk) + _tile_bytes(tk, tn)
                       + _tile_bytes(1, tn) + _tile_bytes(tm, tn))
    vmem_limit = int(min(48 * 1024 * 1024,
                         max(16 * 1024 * 1024, vmem_needed + 4 * 1024 * 1024)))

    out2 = pl.pallas_call(
        _complex_linear_kernel,
        out_shape=jax.ShapeDtypeStruct((BKp, M2p), jnp.float32),
        grid_spec=pltpu.PrefetchScalarGridSpec(
            num_scalar_prefetch=0,
            grid=grid,
            in_specs=[
                pl.BlockSpec((tm, tk), lambda i, j, k: (i, k)),   # x interleaved
                pl.BlockSpec((tk, tn), lambda i, j, k: (k, j)),   # W interleaved
                pl.BlockSpec((1, tn), lambda i, j, k: (0, j)),    # bias
            ],
            out_specs=pl.BlockSpec((tm, tn), lambda i, j, k: (i, j)),
        ),
        compiler_params=pltpu.CompilerParams(
            dimension_semantics=("parallel", "parallel", "arbitrary"),
            vmem_limit_bytes=vmem_limit,
        ),
    )(x2, W, b2)

    # Un-pad and reinterpret interleaved f32 back as complex64.
    out = _from_interleaved_f32(out2[:BK, :M2]).reshape(B, K, M)
    return out


def reference(x, A, b):
    out = jnp.einsum('bkl,lm->bkm', x, A) + b
    # CReLU reference (ReLU on real and imaginary parts independently).
    return jax.lax.complex(jnp.maximum(jnp.real(out), 0.0),
                           jnp.maximum(jnp.imag(out), 0.0))


if __name__ == "__main__":
    # Small deterministic shapes implied by the forward: x (B, K, in_features).
    B, K, in_features, out_features = 2, 8, 64, 64

    key = jax.random.PRNGKey(0)
    k_xr, k_xi, k_ar, k_ai, k_br, k_bi = jax.random.split(key, 6)

    x = jax.lax.complex(
        jax.random.normal(k_xr, (B, K, in_features), dtype=jnp.float32),
        jax.random.normal(k_xi, (B, K, in_features), dtype=jnp.float32))

    # Parameters (deterministic synthetic init matching the module's shapes):
    # A ~ randn(in, out, cfloat) * (1/in_features); b ~ randn(1, out, cfloat)
    A = jax.lax.complex(
        jax.random.normal(k_ar, (in_features, out_features), dtype=jnp.float32),
        jax.random.normal(k_ai, (in_features, out_features), dtype=jnp.float32)
    ) * (1.0 / in_features)
    b = jax.lax.complex(
        jax.random.normal(k_br, (1, out_features), dtype=jnp.float32),
        jax.random.normal(k_bi, (1, out_features), dtype=jnp.float32))

    layer = jax.jit(complex_simple_layer)
    out = jax.block_until_ready(layer(x, A, b))

    ref = reference(x, A, b)
    assert out.shape == (B, K, out_features)
    assert out.dtype == jnp.complex64
    assert jnp.allclose(out, ref, atol=1e-5, rtol=1e-5)

    print("KERNEL_OK")
</pallas_src>

<mosaic_0001>
module attributes {stable_mosaic.version = 11 : i64} {
  func.func @_complex_linear_kernel(%arg0: i32, %arg1: i32, %arg2: i32, %arg3: memref<8x128xf32, #tpu.memory_space<vmem>>, %arg4: memref<128x128xf32, #tpu.memory_space<vmem>>, %arg5: memref<1x128xf32, #tpu.memory_space<vmem>>, %arg6: memref<8x128xf32, #tpu.memory_space<vmem>>) attributes {dimension_semantics = [#tpu.dimension_semantics<parallel>, #tpu.dimension_semantics<parallel>, #tpu.dimension_semantics<arbitrary>], iteration_bounds = array<i64: 2, 1, 1>, scalar_prefetch = 0 : i64, scratch_operands = 0 : i64, tpu.core_type = #tpu.core_type<tc>, window_params = [{transform_indices = @transform_0, window_bounds = array<i64: 8, 128>}, {transform_indices = @transform_1, window_bounds = array<i64: 128, 128>}, {transform_indices = @transform_2, window_bounds = array<i64: 1, 128>}, {transform_indices = @transform_3, window_bounds = array<i64: 8, 128>}]} {
    %c0_i32 = arith.constant 0 : i32
    %0 = arith.cmpi eq, %arg2, %c0_i32 : i32
    %1 = arith.extui %0 : i1 to i32
    %c0_i32_0 = arith.constant 0 : i32
    %2 = arith.cmpi ne, %1, %c0_i32_0 : i32
    scf.if %2 {
      %cst_10 = arith.constant 0.000000e+00 : f32
      %12 = vector.broadcast %cst_10 : f32 to vector<8x128xf32>
      %c0_11 = arith.constant 0 : index
      %c0_12 = arith.constant 0 : index
      %13 = vector.load %arg6[%c0_11, %c0_12] : memref<8x128xf32, #tpu.memory_space<vmem>>, vector<8x128xf32>
      tpu.vector_store %arg6[%c0_11, %c0_12], %12 {strides = array<i32>} : memref<8x128xf32, #tpu.memory_space<vmem>>, vector<8x128xf32>,
    } else {
    }
    %c0 = arith.constant 0 : index
    %c0_1 = arith.constant 0 : index
    %3 = vector.load %arg6[%c0, %c0_1] : memref<8x128xf32, #tpu.memory_space<vmem>>, vector<8x128xf32>
    %c0_2 = arith.constant 0 : index
    %c0_3 = arith.constant 0 : index
    %4 = vector.load %arg3[%c0_2, %c0_3] : memref<8x128xf32, #tpu.memory_space<vmem>>, vector<8x128xf32>
    %c0_4 = arith.constant 0 : index
    %c0_5 = arith.constant 0 : index
    %5 = vector.load %arg4[%c0_4, %c0_5] : memref<128x128xf32, #tpu.memory_space<vmem>>, vector<128x128xf32>
    %cst = arith.constant dense<0.000000e+00> : vector<8x128xf32>
    %6 = tpu.matmul %4, %5, %cst {dimension_numbers = #tpu.dot_dimension_numbers<[1], [0], [0], [1], [0, 0, 1, 1], [], []>, precision = #tpu.contract_precision<fp32>} : vector<8x128xf32>, vector<128x128xf32>, vector<8x128xf32> -> vector<8x128xf32>
    %7 = arith.addf %3, %6 : vector<8x128xf32>
    %c0_6 = arith.constant 0 : index
    %c0_7 = arith.constant 0 : index
    %8 = vector.load %arg6[%c0_6, %c0_7] : memref<8x128xf32, #tpu.memory_space<vmem>>, vector<8x128xf32>
    tpu.vector_store %arg6[%c0_6, %c0_7], %7 {strides = array<i32>} : memref<8x128xf32, #tpu.memory_space<vmem>>, vector<8x128xf32>,
    %c0_i32_8 = arith.constant 0 : i32
    %9 = arith.cmpi eq, %arg2, %c0_i32_8 : i32
    %10 = arith.extui %9 : i1 to i32
    %c0_i32_9 = arith.constant 0 : i32
    %11 = arith.cmpi ne, %10, %c0_i32_9 : i32
    scf.if %11 {
      %c0_10 = arith.constant 0 : index
      %c0_11 = arith.constant 0 : index
      %12 = vector.load %arg6[%c0_10, %c0_11] : memref<8x128xf32, #tpu.memory_space<vmem>>, vector<8x128xf32>
      %c0_12 = arith.constant 0 : index
      %c0_13 = arith.constant 0 : index
      %13 = vector.load %arg5[%c0_12, %c0_13] : memref<1x128xf32, #tpu.memory_space<vmem>>, vector<1x128xf32>
      %14 = vector.broadcast %13 : vector<1x128xf32> to vector<8x128xf32>
      %15 = arith.addf %12, %14 : vector<8x128xf32>
      %cst_14 = arith.constant 0.000000e+00 : f32
      %16 = vector.broadcast %cst_14 : f32 to vector<8x128xf32>
      %17 = arith.maximumf %15, %16 : vector<8x128xf32>
      %c0_15 = arith.constant 0 : index
      %c0_16 = arith.constant 0 : index
      %18 = vector.load %arg6[%c0_15, %c0_16] : memref<8x128xf32, #tpu.memory_space<vmem>>, vector<8x128xf32>
      tpu.vector_store %arg6[%c0_15, %c0_16], %17 {strides = array<i32>} : memref<8x128xf32, #tpu.memory_space<vmem>>, vector<8x128xf32>,
    } else {
    }
    return
  }
  func.func @transform_0(%arg0: i32, %arg1: i32, %arg2: i32) -> (i32, i32) {
    %c0_i32 = arith.constant 0 : i32
    return %arg0, %arg2 : i32, i32
  }
  func.func @transform_1(%arg0: i32, %arg1: i32, %arg2: i32) -> (i32, i32) {
    %c0_i32 = arith.constant 0 : i32
    return %arg2, %arg1 : i32, i32
  }
  func.func @transform_2(%arg0: i32, %arg1: i32, %arg2: i32) -> (i32, i32) {
    %c0_i32 = arith.constant 0 : i32
    %c0_i32_0 = arith.constant 0 : i32
    return %c0_i32, %arg1 : i32, i32
  }
  func.func @transform_3(%arg0: i32, %arg1: i32, %arg2: i32) -> (i32, i32) {
    %c0_i32 = arith.constant 0 : i32
    return %arg0, %arg1 : i32, i32
  }
}

</mosaic_0001>

<bundles_post_ra>
// kernel: custom-call.3
= control target key start
LH: loop header
LB: loop body
LE: loop exit
PB: predicated region body
PF: predicated region fallthrough
CT: control target
= control target key end

     0   :  { %s51_s0 = inlined_call_operand.hbm [shape: c64[64,64], index: 0, kind: input, shape index: {}]   ;;  %s52_s1 = inlined_call_operand.vmem [shape: f32[64,64], index: 1, kind: output, shape index: {}]  }
   0x1   :  { %s2_s8 = scalar_lea.hbm %s51_s0, 1024 }
   0x2   :  { %3 = vsyncpa [#allocation0], 0  ;;  %s4_s11 = sshll.u32 %s52_s1, 4  ;;  %s5_s11 = int_to_ptr.vmem [resolvable:$true] %s4_s11 }
   0x3   :  { %s20_s12 = scalar_lea.vmem %s5_s11, 1024  ;;  %p25_p1 = scmp.lt.s32.totalorder %s5_s11, %s5_s11 }
   0x4   :  { %p21_p0 = scmp.ne.s32.totalorder %s5_s11, %s20_s12  ;;  %p26_p2 = scmp.lt.s32.totalorder %s20_s12, %s20_s12 }
   0x6   :  { %p27_p3 = por %p26_p2, %p25_p1 }
   0x8   :  { %p28_p4 = pnand %p27_p3, %p21_p0 }
   0xa   :  { %31 = shalt.err (!%p28_p4)  }
   0xb   :  { %7 = dma.hbm_to_vmem [thread:$0]  %s2_s8, 1024, %s5_s11, [#allocation0] }
   0xc   :  { %33 = dma.done.wait [#allocation0], 1024  }
   0xd   :  { %34 = vsyncadd [#allocation0], 4294966272 }
   0xe   :  { %9 = vsyncpa [#allocation0], 1 }

// kernel: custom-call.2
= control target key start
LH: loop header
LB: loop body
LE: loop exit
PB: predicated region body
PF: predicated region fallthrough
CT: control target
= control target key end

     0   :  { %2 = vsyncpa [#allocation0], 0  ;;  %s47_s0 = inlined_call_operand.hbm [shape: c64[64,64], index: 0, kind: input, shape index: {}]   ;;  %s48_s1 = inlined_call_operand.vmem [shape: f32[64,64], index: 1, kind: output, shape index: {}]  }
   0x1   :  { %s3_s8 = sshll.u32 %s48_s1, 4  ;;  %s4_s8 = int_to_ptr.vmem [resolvable:$true] %s3_s8 }
   0x2   :  { %s17_s9 = scalar_lea.vmem %s4_s8, 1024  ;;  %p22_p1 = scmp.lt.s32.totalorder %s4_s8, %s4_s8 }
   0x3   :  { %p18_p0 = scmp.ne.s32.totalorder %s4_s8, %s17_s9  ;;  %p23_p2 = scmp.lt.s32.totalorder %s17_s9, %s17_s9 }
   0x5   :  { %p24_p3 = por %p23_p2, %p22_p1 }
   0x7   :  { %p25_p4 = pnand %p24_p3, %p18_p0 }
   0x9   :  { %28 = shalt.err (!%p25_p4)  }
   0xa   :  { %6 = dma.hbm_to_vmem [thread:$0]  %s47_s0, 1024, %s4_s8, [#allocation0] }
   0xb   :  { %29 = dma.done.wait [#allocation0], 1024  }
   0xc   :  { %30 = vsyncadd [#allocation0], 4294966272 }
   0xd   :  { %8 = vsyncpa [#allocation0], 1 }

// kernel: custom-call
= control target key start
LH: loop header
LB: loop body
LE: loop exit
PB: predicated region body
PF: predicated region fallthrough
CT: control target
= control target key end

     0   :  { %2 = vsyncpa [#allocation0], 0  ;;  %s47_s0 = inlined_call_operand.hbm [shape: c64[2,8,64], index: 0, kind: input, shape index: {}]   ;;  %s48_s1 = inlined_call_operand.vmem [shape: f32[2,8,64], index: 1, kind: output, shape index: {}]  }
   0x1   :  { %s3_s8 = sshll.u32 %s48_s1, 4  ;;  %s4_s8 = int_to_ptr.vmem [resolvable:$true] %s3_s8 }
   0x2   :  { %s17_s9 = scalar_lea.vmem %s4_s8, 256  ;;  %p22_p1 = scmp.lt.s32.totalorder %s4_s8, %s4_s8 }
   0x3   :  { %p18_p0 = scmp.ne.s32.totalorder %s4_s8, %s17_s9  ;;  %p23_p2 = scmp.lt.s32.totalorder %s17_s9, %s17_s9 }
   0x5   :  { %p24_p3 = por %p23_p2, %p22_p1 }
   0x7   :  { %p25_p4 = pnand %p24_p3, %p18_p0 }
   0x9   :  { %28 = shalt.err (!%p25_p4)  }
   0xa   :  { %6 = dma.hbm_to_vmem [thread:$0]  %s47_s0, 256, %s4_s8, [#allocation0] }
   0xb   :  { %29 = dma.done.wait [#allocation0], 256  }
   0xc   :  { %30 = vsyncadd [#allocation0], 4294967040 }
   0xd   :  { %8 = vsyncpa [#allocation0], 1 }

// kernel: custom-call.1
= control target key start
LH: loop header
LB: loop body
LE: loop exit
PB: predicated region body
PF: predicated region fallthrough
CT: control target
= control target key end

     0   :  { %s51_s0 = inlined_call_operand.hbm [shape: c64[2,8,64], index: 0, kind: input, shape index: {}]   ;;  %s52_s1 = inlined_call_operand.vmem [shape: f32[2,8,64], index: 1, kind: output, shape index: {}]  }
   0x1   :  { %s2_s8 = scalar_lea.hbm %s51_s0, 256 }
   0x2   :  { %3 = vsyncpa [#allocation0], 0  ;;  %s4_s11 = sshll.u32 %s52_s1, 4  ;;  %s5_s11 = int_to_ptr.vmem [resolvable:$true] %s4_s11 }
   0x3   :  { %s20_s12 = scalar_lea.vmem %s5_s11, 256  ;;  %p25_p1 = scmp.lt.s32.totalorder %s5_s11, %s5_s11 }
   0x4   :  { %p21_p0 = scmp.ne.s32.totalorder %s5_s11, %s20_s12  ;;  %p26_p2 = scmp.lt.s32.totalorder %s20_s12, %s20_s12 }
   0x6   :  { %p27_p3 = por %p26_p2, %p25_p1 }
   0x8   :  { %p28_p4 = pnand %p27_p3, %p21_p0 }
   0xa   :  { %31 = shalt.err (!%p28_p4)  }
   0xb   :  { %7 = dma.hbm_to_vmem [thread:$0]  %s2_s8, 256, %s5_s11, [#allocation0] }
   0xc   :  { %33 = dma.done.wait [#allocation0], 256  }
   0xd   :  { %34 = vsyncadd [#allocation0], 4294967040 }
   0xe   :  { %9 = vsyncpa [#allocation0], 1 }

// kernel: custom-call.4
= control target key start
LH: loop header
LB: loop body
LE: loop exit
PB: predicated region body
PF: predicated region fallthrough
CT: control target
= control target key end

     0   :  { %2 = vsyncpa [#allocation0], 0  ;;  %s47_s0 = inlined_call_operand.hbm [shape: c64[1,64], index: 0, kind: input, shape index: {}]   ;;  %s48_s1 = inlined_call_operand.vmem [shape: f32[1,64], index: 1, kind: output, shape index: {}]  }
   0x1   :  { %s3_s8 = sshll.u32 %s48_s1, 4  ;;  %s4_s8 = int_to_ptr.vmem [resolvable:$true] %s3_s8 }
   0x2   :  { %s17_s9 = scalar_lea.vmem %s4_s8, 16  ;;  %p22_p1 = scmp.lt.s32.totalorder %s4_s8, %s4_s8 }
   0x3   :  { %p18_p0 = scmp.ne.s32.totalorder %s4_s8, %s17_s9  ;;  %p23_p2 = scmp.lt.s32.totalorder %s17_s9, %s17_s9 }
   0x5   :  { %p24_p3 = por %p23_p2, %p22_p1 }
   0x7   :  { %p25_p4 = pnand %p24_p3, %p18_p0 }
   0x9   :  { %28 = shalt.err (!%p25_p4)  }
   0xa   :  { %6 = dma.hbm_to_vmem [thread:$0]  %s47_s0, 16, %s4_s8, [#allocation0] }
   0xb   :  { %29 = dma.done.wait [#allocation0], 16  }
   0xc   :  { %30 = vsyncadd [#allocation0], 4294967280 }
   0xd   :  { %8 = vsyncpa [#allocation0], 1 }

// kernel: custom-call.5
= control target key start
LH: loop header
LB: loop body
LE: loop exit
PB: predicated region body
PF: predicated region fallthrough
CT: control target
= control target key end

     0   :  { %s51_s0 = inlined_call_operand.hbm [shape: c64[1,64], index: 0, kind: input, shape index: {}]   ;;  %s52_s1 = inlined_call_operand.vmem [shape: f32[1,64], index: 1, kind: output, shape index: {}]  }
   0x1   :  { %s2_s8 = scalar_lea.hbm %s51_s0, 16 }
   0x2   :  { %3 = vsyncpa [#allocation0], 0  ;;  %s4_s11 = sshll.u32 %s52_s1, 4  ;;  %s5_s11 = int_to_ptr.vmem [resolvable:$true] %s4_s11 }
   0x3   :  { %s20_s12 = scalar_lea.vmem %s5_s11, 16  ;;  %p25_p1 = scmp.lt.s32.totalorder %s5_s11, %s5_s11 }
   0x4   :  { %p21_p0 = scmp.ne.s32.totalorder %s5_s11, %s20_s12  ;;  %p26_p2 = scmp.lt.s32.totalorder %s20_s12, %s20_s12 }
   0x6   :  { %p27_p3 = por %p26_p2, %p25_p1 }
   0x8   :  { %p28_p4 = pnand %p27_p3, %p21_p0 }
   0xa   :  { %31 = shalt.err (!%p28_p4)  }
   0xb   :  { %7 = dma.hbm_to_vmem [thread:$0]  %s2_s8, 16, %s5_s11, [#allocation0] }
   0xc   :  { %33 = dma.done.wait [#allocation0], 16  }
   0xd   :  { %34 = vsyncadd [#allocation0], 4294967280 }
   0xe   :  { %9 = vsyncpa [#allocation0], 1 }

// kernel: complex_simple_layer.1
= control target key start
LH: loop header
LB: loop body
LE: loop exit
PB: predicated region body
PF: predicated region fallthrough
CT: control target
= control target key end

     0   :  { %s1435_s12 = smov 0   ;;  %s1437_s13 = smov 0   ;;  %s1895_s0 = inlined_call_operand.vmem [shape: f32[16,128], index: 0, kind: input, shape index: {}]   ;;  %s1896_s1 = inlined_call_operand.vmem [shape: f32[128,128], index: 1, kind: input, shape index: {}]   ;;  %s1897_s2 = inlined_call_operand.vmem [shape: f32[1,128], index: 2, kind: input, shape index: {}]   ;;  %s1898_s3 = inlined_call_operand.vmem [shape: f32[16,128], index: 3, kind: output, shape index: {}]  }
   0x1   :  { %s1439_s14 = smov 0  }
   0x2 LB: > { %s32_s15 = sadd.s32 1, %s1407_s13  ;;  %p1045_p0 = scmp.ge.s32.totalorder %s1411_s14, 1  ;;  %s1411_s14 = sphi %s1439_s14, %s13_s14   ;;  %s1407_s13 = sphi %s1437_s13, %s1900_s13   ;;  %s1403_s12 = sphi %s1435_s12, %s1899_s12  }
   0x3   : > { %p34_p1 = scmp.ge.s32.totalorder %s32_s15, 2  ;;  %p186_p2 = scmp.lt.s32.totalorder %s1411_s14, 3 }
   0x5   : > { %s1902_s15 = smov (%p34_p1, %s32_s15), 0  ;;  %p187_p3 = pnand %p1045_p0, %p186_p2 }
   0x6   : > { %p225_p4 = scmp.lt.s32.totalorder (!%p187_p3), %s1403_s12, 1 }
   0x7   : > { %190 = sbr.rel (%p187_p3) target bundleno = 322 (0x142), region = 32 }
   0xc   : > { %v273_v0 = vld [vmem:[%s1896_s1 + $0x78] sm:$0xff]  ;;  %v272_v1 = vld [vmem:[%s1896_s1 + $0x70] sm:$0xff]  ;;  %v271_v2 = vld [vmem:[%s1896_s1 + $0x68] sm:$0xff]  ;;  %v1413_v3 = vmov 0.0   ;;  %vm1414_vm0 = vmmov 0   ;;  %s1904_s12 = smov (!%p225_p4, %s1403_s12), 1 }
   0xd   : > { %1153 = vmatprep.subr.mxu0 %v1413_v3  ;;  %v1466_v4 = vand.u32 4294901760, %v273_v0  ;;  %v1468_v5 = vand.u32 4294901760, %v272_v1  ;;  %v1470_v6 = vand.u32 4294901760, %v271_v2  ;;  %v270_v7 = vld [vmem:[%s1896_s1 + $0x60] sm:$0xff]  ;;  %1188 = vmatprep.subr.mxu1 %v1413_v3  ;;  %v269_v8 = vld [vmem:[%s1896_s1 + $0x58] sm:$0xff]  ;;  %v268_v9 = vld [vmem:[%s1896_s1 + $0x50] sm:$0xff] }
   0xe   : > { %v1482_v10 = vand.u32 4294901760, %v270_v7  ;;  %v1484_v11 = vand.u32 4294901760, %v269_v8  ;;  %v1486_v12 = vand.u32 4294901760, %v268_v9  ;;  %v267_v13 = vld [vmem:[%s1896_s1 + $0x48] sm:$0xff]  ;;  %v266_v14 = vld [vmem:[%s1896_s1 + $0x40] sm:$0xff]  ;;  %1185 = vmatprep.mubr.msk.f32.mxu0 %vm1414_vm0, %v1413_v3  ;;  %1220 = vmatprep.mubr.msk.f32.mxu1 %vm1414_vm0, %v1413_v3  ;;  %v265_v19 = vld [vmem:[%s1896_s1 + $0x38] sm:$0xff] }
   0xf   : > { %1154 = vmatpush3.msra.mxu0 %v1466_v4  ;;  %v1500_v15 = vsub.f32 %v273_v0, %v1466_v4  ;;  %v1503_v16 = vsub.f32 %v272_v1, %v1468_v5  ;;  %v1505_v17 = vand.u32 4294901760, %v267_v13  ;;  %v1508_v18 = vsub.f32 %v271_v2, %v1470_v6  ;;  %v264_v26 = vld [vmem:[%s1896_s1 + $0x30] sm:$0xff]  ;;  %s1046_s9 = sshll.u32 %s1904_s12, 3  ;;  %v263_v36 = vld [vmem:[%s1896_s1 + $0x28] sm:$0xff]  ;;  %v262_v41 = vld [vmem:[%s1896_s1 + $0x20] sm:$0xff] }
  0x10   : > { %1155 = vmatprep.subr.mxu0 %v1413_v3  ;;  %v1520_v20 = vsub.f32 %v270_v7, %v1482_v10  ;;  %v1523_v21 = vsub.f32 %v269_v8, %v1484_v11  ;;  %v1529_v25 = vand.u32 4294901760, %v266_v14  ;;  %v1536_v28 = vand.u32 4294901760, %v265_v19  ;;  %s231_s20 = scalar_lea.vmem %s1895_s0, %s1046_s9  ;;  %v261_v49 = vld [vmem:[%s1896_s1 + $0x18] sm:$0xff]  ;;  %v260_v54 = vld [vmem:[%s1896_s1 + $0x10] sm:$0xff]  ;;  %v259_v60 = vld [vmem:[%s1896_s1 + $0x8] sm:$0xff]  ;;  %s250_s6 = scalar_lea.vmem %s1898_s3, %s1046_s9 }
  0x11   : > { %1156 = vmatpush3.msra.mxu0 %v1468_v5  ;;  %v368_v22 = vand.u32 4294901760, %v1500_v15  ;;  %v375_v23 = vand.u32 4294901760, %v1503_v16  ;;  %v382_v24 = vand.u32 4294901760, %v1508_v18  ;;  %v1540_v30 = vsub.f32 %v268_v9, %v1486_v12  ;;  %v257_v50 = vld [vmem:[%s231_s20] sm:$0xff] }
  0x12   : > { %1157 = vmatprep.subr.mxu0 %v1413_v3  ;;  %v389_v27 = vand.u32 4294901760, %v1520_v20  ;;  %v396_v29 = vand.u32 4294901760, %v1523_v21  ;;  %v1554_v34 = vsub.f32 %v267_v13, %v1505_v17  ;;  %v1557_v35 = vand.u32 4294901760, %v264_v26  ;;  %v258_v7 = vld [vmem:[%s1896_s1] sm:$0xff] }
  0x13   : > { %1158 = vmatpush3.msra.mxu0 %v1470_v6  ;;  %v369_v31 = vsub.f32 %v1500_v15, %v368_v22  ;;  %v376_v32 = vsub.f32 %v1503_v16, %v375_v23  ;;  %v383_v33 = vsub.f32 %v1508_v18, %v382_v24  ;;  %v403_v40 = vand.u32 4294901760, %v1540_v30 }
  0x14   : > { %1159 = vmatprep.subr.mxu0 %v1413_v3  ;;  %v390_v39 = vsub.f32 %v1520_v20, %v389_v27  ;;  %v397_v42 = vsub.f32 %v1523_v21, %v396_v29  ;;  %v1580_v43 = vsub.f32 %v266_v14, %v1529_v25  ;;  %v1583_v45 = vand.u32 4294901760, %v263_v36 }
  0x15   : > { %1160 = vmatpush3.msra.mxu0 %v1482_v10  ;;  %v370_v37 = vand.u32 4294901760, %v369_v31  ;;  %v377_v38 = vand.u32 4294901760, %v376_v32  ;;  %v384_v44 = vand.u32 4294901760, %v383_v33  ;;  %v410_v46 = vand.u32 4294901760, %v1554_v34 }
  0x16   : > { %1161 = vmatprep.subr.mxu0 %v1413_v3  ;;  %v1587_v47 = vsub.f32 %v265_v19, %v1536_v28  ;;  %v1591_v48 = vand.u32 4294901760, %v262_v41  ;;  %v391_v51 = vand.u32 4294901760, %v390_v39  ;;  %v404_v52 = vsub.f32 %v1540_v30, %v403_v40 }
  0x17   : > { %1162 = vmatpush3.msra.mxu0 %v1484_v11  ;;  %1189 = vmatpush3.msra.mxu1 %v370_v37  ;;  %v417_v53 = vand.u32 4294901760, %v1580_v43  ;;  %v1605_v55 = vsub.f32 %v264_v26, %v1557_v35  ;;  %v398_v56 = vand.u32 4294901760, %v397_v42  ;;  %v411_v58 = vsub.f32 %v1554_v34, %v410_v46 }
  0x18   : > { %1163 = vmatprep.subr.mxu0 %v1413_v3  ;;  %1190 = vmatprep.subr.mxu1 %v1413_v3  ;;  %v424_v57 = vand.u32 4294901760, %v1587_v47  ;;  %v1614_v59 = vand.u32 4294901760, %v261_v49  ;;  %v1620_v61 = vsub.f32 %v263_v36, %v1583_v45  ;;  %v1622_v62 = vand.u32 4294901760, %v257_v50 }
  0x19   : > { %1164 = vmatpush3.msra.mxu0 %v1486_v12  ;;  %1191 = vmatpush3.msra.mxu1 %v377_v38  ;;  %v1626_v63 = vand.u32 4294901760, %v260_v54  ;;  %v405_v0 = vand.u32 4294901760, %v404_v52  ;;  %v418_v1 = vsub.f32 %v1580_v43, %v417_v53  ;;  %v431_v2 = vand.u32 4294901760, %v1605_v55 }
  0x1a   : > { %1165 = vmatprep.subr.mxu0 %v1413_v3  ;;  %1192 = vmatprep.subr.mxu1 %v1413_v3  ;;  %v1637_v8 = vsub.f32 %v262_v41, %v1591_v48  ;;  %v425_v9 = vsub.f32 %v1587_v47, %v424_v57  ;;  %v1644_v13 = vand.u32 4294901760, %v259_v60  ;;  %v412_v14 = vand.u32 4294901760, %v411_v58 }
  0x1b   : > { %1166 = vmatpush3.msra.mxu0 %v1505_v17  ;;  %1193 = vmatpush3.msra.mxu1 %v384_v44  ;;  %v438_v19 = vand.u32 4294901760, %v1620_v61  ;;  %v1649_v26 = vsub.f32 %v257_v50, %v1622_v62  ;;  %v1652_v31 = vsub.f32 %v261_v49, %v1614_v59  ;;  %v1656_v32 = vand.u32 4294901760, %v258_v7 }
  0x1c   : > { %1167 = vmatprep.subr.mxu0 %v1413_v3  ;;  %1194 = vmatprep.subr.mxu1 %v1413_v3  ;;  %v419_v33 = vand.u32 4294901760, %v418_v1  ;;  %v432_v36 = vsub.f32 %v1605_v55, %v431_v2  ;;  %v445_v37 = vand.u32 4294901760, %v1637_v8  ;;  %v1664_v38 = vsub.f32 %v260_v54, %v1626_v63 }
  0x1d   : > { %1168 = vmatpush3.msra.mxu0 %v1529_v25  ;;  %1195 = vmatpush3.msra.mxu1 %v391_v51  ;;  %v426_v39 = vand.u32 4294901760, %v425_v9  ;;  %v439_v41 = vsub.f32 %v1620_v61, %v438_v19  ;;  %v357_v42 = vand.u32 4294901760, %v1649_v26  ;;  %v452_v44 = vand.u32 4294901760, %v1652_v31 }
  0x1e   : > { %1169 = vmatprep.subr.mxu0 %v1413_v3  ;;  %1196 = vmatprep.subr.mxu1 %v1413_v3  ;;  %v1675_v49 = vsub.f32 %v259_v60, %v1644_v13  ;;  %v433_v50 = vand.u32 4294901760, %v432_v36  ;;  %v446_v51 = vsub.f32 %v1637_v8, %v445_v37  ;;  %v459_v52 = vand.u32 4294901760, %v1664_v38 }
  0x1f   : > { %1170 = vmatpush3.msra.mxu0 %v1536_v28  ;;  %1197 = vmatpush3.msra.mxu1 %v398_v56  ;;  %v1685_v54 = vsub.f32 %v258_v7, %v1656_v32  ;;  %v440_v56 = vand.u32 4294901760, %v439_v41  ;;  %v358_v58 = vsub.f32 %v1649_v26, %v357_v42  ;;  %v453_v60 = vsub.f32 %v1652_v31, %v452_v44 }
  0x20   : > { %1171 = vmatprep.subr.mxu0 %v1413_v3  ;;  %1198 = vmatprep.subr.mxu1 %v1413_v3  ;;  %v447_v1 = vand.u32 4294901760, %v446_v51  ;;  %v460_v7 = vsub.f32 %v1664_v38, %v459_v52 }
  0x21   : > { %1172 = vmatpush3.msra.mxu0 %v1557_v35  ;;  %1199 = vmatpush3.msra.mxu1 %v405_v0  ;;  %v466_v0 = vand.u32 4294901760, %v1675_v49  ;;  %v473_v9 = vand.u32 4294901760, %v1685_v54 }
  0x22   : > { %1173 = vmatprep.subr.mxu0 %v1413_v3  ;;  %1200 = vmatprep.subr.mxu1 %v1413_v3 }
  0x23   : > { %1174 = vmatpush3.msra.mxu0 %v1583_v45  ;;  %1201 = vmatpush3.msra.mxu1 %v412_v14  ;;  %v359_v14 = vand.u32 4294901760, %v358_v58  ;;  %v467_v36 = vsub.f32 %v1675_v49, %v466_v0  ;;  %v474_v41 = vsub.f32 %v1685_v54, %v473_v9 }
  0x24   : > { %1175 = vmatprep.subr.mxu0 %v1413_v3  ;;  %1202 = vmatprep.subr.mxu1 %v1413_v3 }
  0x25   : > { %1176 = vmatpush3.msra.mxu0 %v1591_v48  ;;  %1203 = vmatpush3.msra.mxu1 %v419_v33  ;;  %v454_v33 = vand.u32 4294901760, %v453_v60  ;;  %v475_v51 = vand.u32 4294901760, %v474_v41 }
  0x26   : > { %1177 = vmatprep.subr.mxu0 %v1413_v3  ;;  %1204 = vmatprep.subr.mxu1 %v1413_v3 }
  0x27   : > { %1178 = vmatpush3.msra.mxu0 %v1614_v59  ;;  %1205 = vmatpush3.msra.mxu1 %v426_v39  ;;  %v461_v39 = vand.u32 4294901760, %v460_v7 }
  0x28   : > { %1179 = vmatprep.subr.mxu0 %v1413_v3  ;;  %1206 = vmatprep.subr.mxu1 %v1413_v3 }
  0x29   : > { %1180 = vmatpush3.msra.mxu0 %v1626_v63  ;;  %1207 = vmatpush3.msra.mxu1 %v433_v50  ;;  %v468_v50 = vand.u32 4294901760, %v467_v36 }
  0x2a   : > { %1181 = vmatprep.subr.mxu0 %v1413_v3  ;;  %1208 = vmatprep.subr.mxu1 %v1413_v3 }
  0x2b   : > { %1182 = vmatpush3.msra.mxu0 %v1644_v13  ;;  %1209 = vmatpush3.msra.mxu1 %v440_v56 }
  0x2c   : > { %1183 = vmatprep.subr.mxu0 %v1413_v3  ;;  %1210 = vmatprep.subr.mxu1 %v1413_v3 }
  0x2d   : > { %1184 = vmatpush3.msra.mxu0 %v1656_v32  ;;  %1211 = vmatpush3.msra.mxu1 %v447_v1 }
  0x2e   : > { %1212 = vmatprep.subr.mxu1 %v1413_v3  ;;  %1223 = vmatprep.subr.mxu0 %v1413_v3 }
  0x2f   : > { %1186 = vmatmul.mubr.f32.vlgmr.msra.gmra.mxu0 %v359_v14  ;;  %1213 = vmatpush3.msra.mxu1 %v454_v33 }
  0x30   : > { %1224 = vmatpush3.msra.mxu0 %v1500_v15  ;;  %1214 = vmatprep.subr.mxu1 %v1413_v3 }
  0x31   : > { %1225 = vmatprep.subr.mxu0 %v1413_v3  ;;  %1215 = vmatpush3.msra.mxu1 %v461_v39 }
  0x32   : > { %1226 = vmatpush3.msra.mxu0 %v1503_v16  ;;  %1216 = vmatprep.subr.mxu1 %v1413_v3 }
  0x33   : > { %1227 = vmatprep.subr.mxu0 %v1413_v3  ;;  %1217 = vmatpush3.msra.mxu1 %v468_v50 }
  0x34   : > { %1228 = vmatpush3.msra.mxu0 %v1508_v18  ;;  %1218 = vmatprep.subr.mxu1 %v1413_v3 }
  0x35   : > { %1229 = vmatprep.subr.mxu0 %v1413_v3  ;;  %1219 = vmatpush3.msra.mxu1 %v475_v51 }
  0x36   : > { %1230 = vmatpush3.msra.mxu0 %v1520_v20  ;;  %1221 = vmatmul.mubr.f32.vlgmr.msra.gmra.mxu1 %v1622_v62 }
  0x37   : > { %1231 = vmatprep.subr.mxu0 %v1413_v3  ;;  %1258 = vmatprep.subr.mxu1 %v1413_v3 }
  0x38   : > { %1232 = vmatpush3.msra.mxu0 %v1523_v21  ;;  %1259 = vmatpush3.msra.mxu1 %v1466_v4 }
  0x39   : > { %1233 = vmatprep.subr.mxu0 %v1413_v3  ;;  %1260 = vmatprep.subr.mxu1 %v1413_v3 }
  0x3a   : > { %1234 = vmatpush3.msra.mxu0 %v1540_v30  ;;  %1261 = vmatpush3.msra.mxu1 %v1468_v5 }
  0x3b   : > { %1235 = vmatprep.subr.mxu0 %v1413_v3  ;;  %1262 = vmatprep.subr.mxu1 %v1413_v3 }
  0x3c   : > { %1236 = vmatpush3.msra.mxu0 %v1554_v34  ;;  %1263 = vmatpush3.msra.mxu1 %v1470_v6 }
  0x3d   : > { %1237 = vmatprep.subr.mxu0 %v1413_v3  ;;  %1264 = vmatprep.subr.mxu1 %v1413_v3 }
  0x3e   : > { %1238 = vmatpush3.msra.mxu0 %v1580_v43  ;;  %1265 = vmatpush3.msra.mxu1 %v1482_v10 }
  0x3f   : > { %1239 = vmatprep.subr.mxu0 %v1413_v3  ;;  %1266 = vmatprep.subr.mxu1 %v1413_v3 }
  0x40   : > { %1240 = vmatpush3.msra.mxu0 %v1587_v47  ;;  %1267 = vmatpush3.msra.mxu1 %v1484_v11 }
  0x41   : > { %1241 = vmatprep.subr.mxu0 %v1413_v3  ;;  %1268 = vmatprep.subr.mxu1 %v1413_v3 }
  0x42   : > { %1242 = vmatpush3.msra.mxu0 %v1605_v55  ;;  %1269 = vmatpush3.msra.mxu1 %v1486_v12 }
  0x43   : > { %1243 = vmatprep.subr.mxu0 %v1413_v3  ;;  %1270 = vmatprep.subr.mxu1 %v1413_v3 }
  0x44   : > { %1244 = vmatpush3.msra.mxu0 %v1620_v61  ;;  %1271 = vmatpush3.msra.mxu1 %v1505_v17 }
  0x45   : > { %1245 = vmatprep.subr.mxu0 %v1413_v3  ;;  %1272 = vmatprep.subr.mxu1 %v1413_v3 }
  0x46   : > { %1246 = vmatpush3.msra.mxu0 %v1637_v8  ;;  %1273 = vmatpush3.msra.mxu1 %v1529_v25 }
  0x47   : > { %1247 = vmatprep.subr.mxu0 %v1413_v3  ;;  %1274 = vmatprep.subr.mxu1 %v1413_v3 }
  0x48   : > { %1248 = vmatpush3.msra.mxu0 %v1652_v31  ;;  %1275 = vmatpush3.msra.mxu1 %v1536_v28 }
  0x49   : > { %1249 = vmatprep.subr.mxu0 %v1413_v3  ;;  %1276 = vmatprep.subr.mxu1 %v1413_v3 }
  0x4a   : > { %1250 = vmatpush3.msra.mxu0 %v1664_v38  ;;  %1277 = vmatpush3.msra.mxu1 %v1557_v35 }
  0x4b   : > { %1251 = vmatprep.subr.mxu0 %v1413_v3  ;;  %1278 = vmatprep.subr.mxu1 %v1413_v3 }
  0x4c   : > { %1252 = vmatpush3.msra.mxu0 %v1675_v49  ;;  %1279 = vmatpush3.msra.mxu1 %v1583_v45 }
  0x4d   : > { %1253 = vmatprep.subr.mxu0 %v1413_v3  ;;  %1280 = vmatprep.subr.mxu1 %v1413_v3 }
  0x4e   : > { %1254 = vmatpush3.msra.mxu0 %v1685_v54  ;;  %1255 = vmatprep.mubr.msk.f32.mxu0 %vm1414_vm0, %v1413_v3 }
  0x4f   : > { %1281 = vmatpush3.msra.mxu1 %v1591_v48  ;;  %1256 = vmatmul.mubr.f32.vlgmr.msra.gmra.mxu0 %v1649_v26 }
  0x50   : > { %1282 = vmatprep.subr.mxu1 %v1413_v3  ;;  %1293 = vmatprep.subr.mxu0 %v1413_v3 }
  0x51   : > { %1283 = vmatpush3.msra.mxu1 %v1614_v59  ;;  %1294 = vmatpush3.msra.mxu0 %v368_v22 }
  0x52   : > { %1284 = vmatprep.subr.mxu1 %v1413_v3  ;;  %1295 = vmatprep.subr.mxu0 %v1413_v3 }
  0x53   : > { %1285 = vmatpush3.msra.mxu1 %v1626_v63  ;;  %1296 = vmatpush3.msra.mxu0 %v375_v23 }
  0x54   : > { %1286 = vmatprep.subr.mxu1 %v1413_v3  ;;  %1297 = vmatprep.subr.mxu0 %v1413_v3 }
  0x55   : > { %1287 = vmatpush3.msra.mxu1 %v1644_v13  ;;  %1298 = vmatpush3.msra.mxu0 %v382_v24 }
  0x56   : > { %1288 = vmatprep.subr.mxu1 %v1413_v3  ;;  %1299 = vmatprep.subr.mxu0 %v1413_v3 }
  0x57   : > { %1289 = vmatpush3.msra.mxu1 %v1656_v32  ;;  %1290 = vmatprep.mubr.msk.f32.mxu1 %vm1414_vm0, %v1413_v3 }
  0x58   : > { %1300 = vmatpush3.msra.mxu0 %v389_v27  ;;  %1291 = vmatmul.mubr.f32.vlgmr.msra.gmra.mxu1 %v357_v42 }
  0x59   : > { %1301 = vmatprep.subr.mxu0 %v1413_v3  ;;  %1328 = vmatprep.subr.mxu1 %v1413_v3 }
  0x5a   : > { %1302 = vmatpush3.msra.mxu0 %v396_v29  ;;  %1329 = vmatpush3.msra.mxu1 %v1466_v4 }
  0x5b   : > { %1303 = vmatprep.subr.mxu0 %v1413_v3  ;;  %1330 = vmatprep.subr.mxu1 %v1413_v3 }
  0x5c   : > { %1304 = vmatpush3.msra.mxu0 %v403_v40  ;;  %1331 = vmatpush3.msra.mxu1 %v1468_v5 }
  0x5d   : > { %1305 = vmatprep.subr.mxu0 %v1413_v3  ;;  %1332 = vmatprep.subr.mxu1 %v1413_v3 }
  0x5e   : > { %1306 = vmatpush3.msra.mxu0 %v410_v46  ;;  %1333 = vmatpush3.msra.mxu1 %v1470_v6 }
  0x5f   : > { %1307 = vmatprep.subr.mxu0 %v1413_v3  ;;  %1334 = vmatprep.subr.mxu1 %v1413_v3 }
  0x60   : > { %1308 = vmatpush3.msra.mxu0 %v417_v53  ;;  %1335 = vmatpush3.msra.mxu1 %v1482_v10 }
  0x61   : > { %1309 = vmatprep.subr.mxu0 %v1413_v3  ;;  %1336 = vmatprep.subr.mxu1 %v1413_v3 }
  0x62   : > { %1310 = vmatpush3.msra.mxu0 %v424_v57  ;;  %1337 = vmatpush3.msra.mxu1 %v1484_v11 }
  0x63   : > { %1311 = vmatprep.subr.mxu0 %v1413_v3  ;;  %1338 = vmatprep.subr.mxu1 %v1413_v3 }
  0x64   : > { %1312 = vmatpush3.msra.mxu0 %v431_v2  ;;  %1339 = vmatpush3.msra.mxu1 %v1486_v12 }
  0x65   : > { %1313 = vmatprep.subr.mxu0 %v1413_v3  ;;  %1340 = vmatprep.subr.mxu1 %v1413_v3 }
  0x66   : > { %1314 = vmatpush3.msra.mxu0 %v438_v19  ;;  %1341 = vmatpush3.msra.mxu1 %v1505_v17 }
  0x67   : > { %1315 = vmatprep.subr.mxu0 %v1413_v3  ;;  %1342 = vmatprep.subr.mxu1 %v1413_v3 }
  0x68   : > { %1316 = vmatpush3.msra.mxu0 %v445_v37  ;;  %1343 = vmatpush3.msra.mxu1 %v1529_v25  ;;  %v1048_v25 = vld [vmem:[%s1897_s2] ss:$0 sm:$0xff] }
  0x69   : > { %1317 = vmatprep.subr.mxu0 %v1413_v3  ;;  %1344 = vmatprep.subr.mxu1 %v1413_v3 }
  0x6a   : > { %1318 = vmatpush3.msra.mxu0 %v452_v44  ;;  %1345 = vmatpush3.msra.mxu1 %v1536_v28 }
  0x6b   : > { %1319 = vmatprep.subr.mxu0 %v1413_v3  ;;  %1346 = vmatprep.subr.mxu1 %v1413_v3 }
  0x6c   : > { %1320 = vmatpush3.msra.mxu0 %v459_v52  ;;  %1347 = vmatpush3.msra.mxu1 %v1557_v35 }
  0x6d   : > { %1321 = vmatprep.subr.mxu0 %v1413_v3  ;;  %1348 = vmatprep.subr.mxu1 %v1413_v3 }
  0x6e   : > { %1322 = vmatpush3.msra.mxu0 %v466_v0  ;;  %1349 = vmatpush3.msra.mxu1 %v1583_v45 }
  0x6f   : > { %1323 = vmatprep.subr.mxu0 %v1413_v3  ;;  %1350 = vmatprep.subr.mxu1 %v1413_v3 }
  0x70   : > { %1324 = vmatpush3.msra.mxu0 %v473_v9  ;;  %1325 = vmatprep.mubr.msk.f32.mxu0 %vm1414_vm0, %v1413_v3 }
  0x71   : > { %1351 = vmatpush3.msra.mxu1 %v1591_v48  ;;  %1326 = vmatmul.mubr.f32.vlgmr.msra.gmra.mxu0 %v1622_v62 }
  0x72   : > { %1352 = vmatprep.subr.mxu1 %v1413_v3  ;;  %1360 = vmatprep.mubr.msk.f32.mxu1 %vm1414_vm0, %v1413_v3 }
  0x73   : > { %1353 = vmatpush3.msra.mxu1 %v1614_v59 }
  0x74   : > { %1354 = vmatprep.subr.mxu1 %v1413_v3 }
  0x75   : > { %1355 = vmatpush3.msra.mxu1 %v1626_v63 }
  0x76   : > { %1356 = vmatprep.subr.mxu1 %v1413_v3 }
  0x77   : > { %1357 = vmatpush3.msra.mxu1 %v1644_v13 }
  0x78   : > { %1358 = vmatprep.subr.mxu1 %v1413_v3 }
  0x79   : > { %1359 = vmatpush3.msra.mxu1 %v1656_v32 }
  0x7a   : > { %1361 = vmatmul.mubr.f32.vlgmr.msra.gmra.mxu1 %v1622_v62 }
  0xef   : > { %v361_v4 = vpop.f32.mrf.mxu0 }
  0xf1   : > { %v1187_v5 = vpop.f32.mrf.mxu0 }
  0xf6   : > { %v512_v6 = vpop.f32.mrf.mxu1 }
  0xf7   : > { %v513_v18 = vadd.f32 %v512_v6, %v361_v4 }
  0xf8   : > { %v1222_v10 = vpop.f32.mrf.mxu1 }
 0x10f   : > { %v616_v11 = vpop.f32.mrf.mxu0 }
 0x110   : > { %v617_v21 = vadd.f32 %v616_v11, %v513_v18 }
 0x111   : > { %v1257_v12 = vpop.f32.mrf.mxu0 }
 0x118   : > { %v705_v15 = vpop.f32.mrf.mxu1 }
 0x119   : > { %v706_v22 = vadd.f32 %v705_v15, %v617_v21 }
 0x11a   : > { %v1292_v16 = vpop.f32.mrf.mxu1 }
 0x131   : > { %v824_v17 = vpop.f32.mrf.mxu0 }
 0x132   : > { %v825_v23 = vadd.f32 %v824_v17, %v706_v22 }
 0x133   : > { %v1327_v20 = vpop.f32.mrf.mxu0 }
 0x13a   : > { %v911_v3 = vpop.f32.mrf.mxu1 }
 0x13b   : > { %v912_v24 = vadd.f32 %v911_v3, %v825_v23 }
 0x13c   : > { %v1362_v27 = vpop.f32.mrf.mxu1 }
 0x13d   : > { %v928_v28 = vadd.f32 %v1048_v25, %v912_v24 }
 0x13f   : > { %v929_v29 = vmax.f32 %v928_v28, 0.0 }
 0x141   : > { %930 = vst [vmem:[%s250_s6] sm:$0xff] %v929_v29 }
 0x142 PF: > { %s13_s14 = sadd.s32 1, %s1411_s14   ;;  %s1899_s12 = smov %s1407_s13 }
 0x143   : > { %p10_p5 = scmp.ge.s32.totalorder %s13_s14, 4   ;;  %s1900_s13 = smov %s1902_s15 }
 0x145   :  { %12 = sbr.rel (!%p10_p5) target bundleno = 2 (0x2), region = 76 }

// kernel: custom-call.6
= control target key start
LH: loop header
LB: loop body
LE: loop exit
PB: predicated region body
PF: predicated region fallthrough
CT: control target
= control target key end

     0   :  { %s92_s0 = inlined_call_operand.vmem [shape: f32[2,8,64], index: 0, kind: input, shape index: {}]   ;;  %s93_s1 = inlined_call_operand.vmem [shape: f32[2,8,64], index: 1, kind: input, shape index: {}]   ;;  %s94_s2 = inlined_call_operand.hbm [shape: c64[2,8,64], index: 2, kind: output, shape index: {}]  }
   0x1   :  { %s3_s11 = scalar_lea.hbm %s94_s2, 256 }
   0x2   :  { %4 = vsyncpa [#allocation0], 0  ;;  %s5_s14 = sshll.u32 %s92_s0, 4  ;;  %s6_s14 = int_to_ptr.vmem [resolvable:$true] %s5_s14 }
   0x3   :  { %s18_s15 = scalar_lea.vmem %s6_s14, 256  ;;  %p23_p1 = scmp.lt.s32.totalorder %s6_s14, %s6_s14 }
   0x4   :  { %p19_p0 = scmp.ne.s32.totalorder %s6_s14, %s18_s15  ;;  %p24_p2 = scmp.lt.s32.totalorder %s18_s15, %s18_s15 }
   0x6   :  { %p25_p3 = por %p24_p2, %p23_p1 }
   0x8   :  { %p26_p4 = pnand %p25_p3, %p19_p0 }
   0xa   :  { %29 = shalt.err (!%p26_p4)  }
   0xb   :  { %8 = dma.vmem_to_hbm [thread:$0]  %s6_s14, 256, %s94_s2, [#allocation0] }
   0xc   :  { %61 = dma.done.wait [#allocation0], 256  }
   0xd   :  { %62 = vsyncadd [#allocation0], 4294967040 }
   0xe   :  { %10 = vsyncpa [#allocation0], 1 }
   0xf   :  { %11 = vsyncpa [#allocation1], 0  ;;  %s12_s0 = sshll.u32 %s93_s1, 4  ;;  %s13_s0 = int_to_ptr.vmem [resolvable:$true] %s12_s0 }
  0x10   :  { %s38_s20 = scalar_lea.vmem %s13_s0, 256  ;;  %p43_p6 = scmp.lt.s32.totalorder %s13_s0, %s13_s0 }
  0x11   :  { %p39_p5 = scmp.ne.s32.totalorder %s13_s0, %s38_s20  ;;  %p44_p7 = scmp.lt.s32.totalorder %s38_s20, %s38_s20 }
  0x13   :  { %p45_p8 = por %p44_p7, %p43_p6 }
  0x15   :  { %p46_p9 = pnand %p45_p8, %p39_p5 }
  0x17   :  { %49 = shalt.err (!%p46_p9)  }
  0x18   :  { %15 = dma.vmem_to_hbm [thread:$0]  %s13_s0, 256, %s3_s11, [#allocation1] }
  0x19   :  { %63 = dma.done.wait [#allocation1], 256  }
  0x1a   :  { %64 = vsyncadd [#allocation1], 4294967040 }
  0x1b   :  { %17 = vsyncpa [#allocation1], 1 }

</bundles_post_ra>
